<compile_context>
chip_gen: v5e
topology: v5e:2x2
jax: 0.10.0
libtpu: 0.0.40
codegen_flags: <defaults>
</compile_context>

<pallas_src>
import functools
import math

import jax
import jax.numpy as jnp
from jax.experimental import pallas as pl
from jax.experimental.pallas import tpu as pltpu

P = 128          # padded feature width (one f32 vreg lane span)
ROWS = P + 8     # per-layer block: 128 weight rows + 8 rows (bias in row 128)


# ----------------------------------------------------------------------------
# Fused Pallas kernel: whole VAE forward in one launch.
# ----------------------------------------------------------------------------
def _fused_vae_kernel(n_enc_mid, n_dec_mid,
                      dom_ref,          # scalar-prefetch (SMEM), used by index_maps
                      x_ref, eps_ref, encd_ref, mid_ref, head_ref, decd_ref,
                      out_ref):
    del dom_ref  # domain selection already applied by the BlockSpec index_maps

    def lin_relu(h, w, b):
        return jnp.maximum(
            jnp.dot(h, w, preferred_element_type=jnp.float32) + b, 0.0)

    # Domain encode layer (block for domain_in selected via index_map).
    h = lin_relu(x_ref[...], encd_ref[:P, :], encd_ref[P:P + 1, :])

    # Encoder stack: layers 0 .. n_enc_mid-1 of the mid slab (static offsets).
    for l in range(n_enc_mid):
        r0 = l * ROWS
        h = lin_relu(h, mid_ref[r0:r0 + P, :], mid_ref[r0 + P:r0 + P + 1, :])

    # Fused mu|logvar head: one (128 -> 256) matmul, 128-lane-aligned split.
    ml = lin_relu(h, head_ref[:P, :], head_ref[P:P + 1, :])
    mu = ml[:, :P]
    lv = ml[:, P:]

    # Reparameterize: z = mu + eps * exp(0.5 * logvar).
    # eps is zero-padded beyond dz, so padding lanes of z stay exactly zero.
    z = mu + eps_ref[...] * jnp.exp(0.5 * lv)

    # Decoder stack: layers n_enc_mid .. n_enc_mid+n_dec_mid-1 of the mid slab.
    d = z
    for l in range(n_enc_mid, n_enc_mid + n_dec_mid):
        r0 = l * ROWS
        d = lin_relu(d, mid_ref[r0:r0 + P, :], mid_ref[r0 + P:r0 + P + 1, :])

    # Domain decode layer (block for domain_out selected via index_map).
    d = lin_relu(d, decd_ref[:P, :], decd_ref[P:P + 1, :])

    # Single lane-dense (B, 4*128) writeback: [output | z | mu | logvar].
    out_ref[...] = jnp.concatenate([d, z, mu, lv], axis=1)


# ----------------------------------------------------------------------------
# Wrapper: one pallas_call, scalar-prefetched domain selection.
# ----------------------------------------------------------------------------
def vae_forward(params, x, domain_in, domain_out, eps):
    B = x.shape[0]
    dz = params["dz"]
    dout_final = params["input_size_list"][domain_out]
    n_enc_mid = params["n_enc_mid"]
    n_dec_mid = params["n_dec_mid"]
    n_mid = n_enc_mid + n_dec_mid
    Bp = ((B + 7) // 8) * 8  # pad batch to a full sublane group

    x_pad = jnp.zeros((Bp, P), jnp.float32).at[:B, :x.shape[1]].set(x)
    eps_pad = jnp.zeros((Bp, P), jnp.float32).at[:B, :dz].set(eps)
    dom = jnp.array([domain_in, domain_out], dtype=jnp.int32)

    grid_spec = pltpu.PrefetchScalarGridSpec(
        num_scalar_prefetch=1,
        grid=(1,),
        in_specs=[
            pl.BlockSpec((Bp, P), lambda i, dom: (0, 0)),                 # x
            pl.BlockSpec((Bp, P), lambda i, dom: (0, 0)),                 # eps
            pl.BlockSpec((None, ROWS, P), lambda i, dom: (dom[0], 0, 0)), # enc dom
            pl.BlockSpec((n_mid * ROWS, P), lambda i, dom: (0, 0)),       # mid slab
            pl.BlockSpec((ROWS, 2 * P), lambda i, dom: (0, 0)),           # mu|lv head
            pl.BlockSpec((None, ROWS, P), lambda i, dom: (dom[1], 0, 0)), # dec dom
        ],
        out_specs=pl.BlockSpec((Bp, 4 * P), lambda i, dom: (0, 0)),
    )

    kernel = functools.partial(_fused_vae_kernel, n_enc_mid, n_dec_mid)
    merged = pl.pallas_call(
        kernel,
        grid_spec=grid_spec,
        out_shape=jax.ShapeDtypeStruct((Bp, 4 * P), jnp.float32),
        compiler_params=pltpu.CompilerParams(
            dimension_semantics=("arbitrary",)),
    )(dom, x_pad, eps_pad,
      params["enc_dom"], params["mid"], params["head"], params["dec_dom"])

    output = merged[:B, :dout_final]
    z = merged[:B, P:P + dz]
    mu = merged[:B, 2 * P:2 * P + dz]
    logvar = merged[:B, 3 * P:3 * P + dz]
    return output, z, mu, logvar


# ----------------------------------------------------------------------------
# Parameter construction: PyTorch nn.Linear-style uniform init (deterministic),
# then packed at build time into 128-lane zero-padded slabs for the kernel.
# The raw (unpadded) weights are kept for the pure-JAX reference.
# ----------------------------------------------------------------------------
def _init_linear(key, din, dout):
    kw, kb = jax.random.split(key)
    bound = 1.0 / math.sqrt(din)
    w = jax.random.uniform(kw, (din, dout), jnp.float32, -bound, bound)
    b = jax.random.uniform(kb, (dout,), jnp.float32, -bound, bound)
    return w, b


def _pack_layer(w, b):
    """(din, dout) weight + (dout,) bias -> (ROWS, P) zero-padded block."""
    din, dout = w.shape
    blk = jnp.zeros((ROWS, P), jnp.float32)
    blk = blk.at[:din, :dout].set(w)
    blk = blk.at[P, :dout].set(b)
    return blk


def make_vae_params(key, input_size_list, layers, n_domain):
    keys = iter(jax.random.split(key, 128))
    raw = {"enc_domain": [], "encoder": [], "decoder": [], "dec_domain": []}
    for i in range(n_domain):
        raw["enc_domain"].append(
            _init_linear(next(keys), input_size_list[i], layers[0]))
    for i in range(1, len(layers) - 1):
        raw["encoder"].append(_init_linear(next(keys), layers[i - 1], layers[i]))
    raw["mu"] = _init_linear(next(keys), layers[-2], layers[-1])
    raw["logvar"] = _init_linear(next(keys), layers[-2], layers[-1])
    for i in range(len(layers) - 2, -1, -1):
        raw["decoder"].append(_init_linear(next(keys), layers[i + 1], layers[i]))
    for i in range(n_domain):
        raw["dec_domain"].append(
            _init_linear(next(keys), layers[0], input_size_list[i]))

    # Packed, lane-dense slabs consumed by the kernel.
    enc_dom = jnp.stack([_pack_layer(w, b) for (w, b) in raw["enc_domain"]])
    dec_dom = jnp.stack([_pack_layer(w, b) for (w, b) in raw["dec_domain"]])
    mid = jnp.concatenate(
        [_pack_layer(w, b) for (w, b) in raw["encoder"] + raw["decoder"]], axis=0)
    head = jnp.concatenate(
        [_pack_layer(*raw["mu"]), _pack_layer(*raw["logvar"])], axis=1)

    return {
        "enc_dom": enc_dom,            # (n_domain, 136, 128)
        "dec_dom": dec_dom,            # (n_domain, 136, 128)
        "mid": mid,                    # ((n_enc_mid+n_dec_mid)*136, 128)
        "head": head,                  # (136, 256): [mu | logvar]
        "n_enc_mid": len(raw["encoder"]),
        "n_dec_mid": len(raw["decoder"]),
        "dz": layers[-1],
        "input_size_list": list(input_size_list),
        "raw": raw,
    }


# ----------------------------------------------------------------------------
# Pure-JAX reference (uses the raw, unpadded weights).
# ----------------------------------------------------------------------------
def vae_forward_ref(params, x, domain_in, domain_out, eps):
    raw = params["raw"]

    def lin_relu(a, w, b):
        return jnp.maximum(a @ w + b, 0.0)

    w, b = raw["enc_domain"][domain_in]
    h = lin_relu(x, w, b)
    for (w, b) in raw["encoder"]:
        h = lin_relu(h, w, b)
    mu = lin_relu(h, *raw["mu"])
    logvar = lin_relu(h, *raw["logvar"])
    z = mu + eps * jnp.exp(0.5 * logvar)
    d = z
    for (w, b) in raw["decoder"]:
        d = lin_relu(d, w, b)
    w, b = raw["dec_domain"][domain_out]
    return lin_relu(d, w, b), z, mu, logvar


if __name__ == "__main__":
    # Small synthetic configuration consistent with the module:
    #   two domains, input_size_list = [48, 40], layers = [32, 24, 16]
    n_domain = 2
    input_size_list = [48, 40]
    layers = [32, 24, 16]
    batch = 8

    root = jax.random.PRNGKey(0)
    k_param, k_x0, k_x1, k_eps = jax.random.split(root, 4)

    params = make_vae_params(k_param, input_size_list, layers, n_domain)
    dz = layers[-1]
    eps = jax.random.normal(k_eps, (batch, dz), jnp.float32)

    # Exercise both (domain_in, domain_out) pairs through the SAME kernel
    # (domain selection is a runtime scalar, handled by scalar prefetch).
    for (d_in, d_out, kx) in ((0, 1, k_x0), (1, 0, k_x1)):
        x = jax.random.normal(kx, (batch, input_size_list[d_in]), jnp.float32)
        out, z, mu, logvar = vae_forward(params, x, d_in, d_out, eps)
        jax.block_until_ready((out, z, mu, logvar))

        r_out, r_z, r_mu, r_lv = vae_forward_ref(params, x, d_in, d_out, eps)
        assert out.shape == (batch, input_size_list[d_out])
        for a, b in ((out, r_out), (z, r_z), (mu, r_mu), (logvar, r_lv)):
            assert jnp.allclose(a, b, atol=1e-5, rtol=1e-5), "mismatch vs reference"

    print("KERNEL_OK")
</pallas_src>

<mosaic_0001>
module attributes {stable_mosaic.version = 11 : i64} {
  func.func @_fused_vae_kernel(%arg0: i32, %arg1: memref<2xi32, #tpu.memory_space<smem>>, %arg2: memref<8x128xf32, #tpu.memory_space<vmem>>, %arg3: memref<8x128xf32, #tpu.memory_space<vmem>>, %arg4: memref<1x136x128xf32, #tpu.memory_space<vmem>>, %arg5: memref<408x128xf32, #tpu.memory_space<vmem>>, %arg6: memref<136x256xf32, #tpu.memory_space<vmem>>, %arg7: memref<1x136x128xf32, #tpu.memory_space<vmem>>, %arg8: memref<8x512xf32, #tpu.memory_space<vmem>>) attributes {dimension_semantics = [#tpu.dimension_semantics<arbitrary>], iteration_bounds = array<i64: 1>, scalar_prefetch = 1 : i64, scratch_operands = 0 : i64, tpu.core_type = #tpu.core_type<tc>, window_params = [{pipeline_mode = #tpu.pipeline_mode<synchronous>, transform_indices = @transform_0, window_bounds = array<i64: 8, 128>}, {pipeline_mode = #tpu.pipeline_mode<synchronous>, transform_indices = @transform_1, window_bounds = array<i64: 8, 128>}, {transform_indices = @transform_2, window_bounds = array<i64: 1, 136, 128>}, {pipeline_mode = #tpu.pipeline_mode<synchronous>, transform_indices = @transform_3, window_bounds = array<i64: 408, 128>}, {pipeline_mode = #tpu.pipeline_mode<synchronous>, transform_indices = @transform_4, window_bounds = array<i64: 136, 256>}, {transform_indices = @transform_5, window_bounds = array<i64: 1, 136, 128>}, {pipeline_mode = #tpu.pipeline_mode<synchronous>, transform_indices = @transform_6, window_bounds = array<i64: 8, 512>}]} {
    %c0 = arith.constant 0 : index
    %c0_0 = arith.constant 0 : index
    %0 = vector.load %arg2[%c0, %c0_0] : memref<8x128xf32, #tpu.memory_space<vmem>>, vector<8x128xf32>
    %c0_1 = arith.constant 0 : index
    %c0_2 = arith.constant 0 : index
    %c0_3 = arith.constant 0 : index
    %1 = vector.load %arg4[%c0_1, %c0_2, %c0_3] : memref<1x136x128xf32, #tpu.memory_space<vmem>>, vector<1x128x128xf32>
    %2 = vector.shape_cast %1 : vector<1x128x128xf32> to vector<128x128xf32>
    %c0_4 = arith.constant 0 : index
    %c128 = arith.constant 128 : index
    %c0_5 = arith.constant 0 : index
    %3 = vector.load %arg4[%c0_4, %c128, %c0_5] : memref<1x136x128xf32, #tpu.memory_space<vmem>>, vector<1x1x128xf32>
    %4 = vector.shape_cast %3 : vector<1x1x128xf32> to vector<1x128xf32>
    %cst = arith.constant dense<0.000000e+00> : vector<8x128xf32>
    %5 = tpu.matmul %0, %2, %cst {dimension_numbers = #tpu.dot_dimension_numbers<[1], [0], [0], [1], [0, 0, 1, 1], [], []>} : vector<8x128xf32>, vector<128x128xf32>, vector<8x128xf32> -> vector<8x128xf32>
    %6 = vector.broadcast %4 : vector<1x128xf32> to vector<8x128xf32>
    %7 = arith.addf %5, %6 : vector<8x128xf32>
    %cst_6 = arith.constant 0.000000e+00 : f32
    %8 = vector.broadcast %cst_6 : f32 to vector<8x128xf32>
    %9 = arith.maximumf %7, %8 : vector<8x128xf32>
    %c0_7 = arith.constant 0 : index
    %c0_8 = arith.constant 0 : index
    %10 = vector.load %arg5[%c0_7, %c0_8] : memref<408x128xf32, #tpu.memory_space<vmem>>, vector<128x128xf32>
    %c128_9 = arith.constant 128 : index
    %c0_10 = arith.constant 0 : index
    %11 = vector.load %arg5[%c128_9, %c0_10] : memref<408x128xf32, #tpu.memory_space<vmem>>, vector<1x128xf32>
    %cst_11 = arith.constant dense<0.000000e+00> : vector<8x128xf32>
    %12 = tpu.matmul %9, %10, %cst_11 {dimension_numbers = #tpu.dot_dimension_numbers<[1], [0], [0], [1], [0, 0, 1, 1], [], []>} : vector<8x128xf32>, vector<128x128xf32>, vector<8x128xf32> -> vector<8x128xf32>
    %13 = vector.broadcast %11 : vector<1x128xf32> to vector<8x128xf32>
    %14 = arith.addf %12, %13 : vector<8x128xf32>
    %cst_12 = arith.constant 0.000000e+00 : f32
    %15 = vector.broadcast %cst_12 : f32 to vector<8x128xf32>
    %16 = arith.maximumf %14, %15 : vector<8x128xf32>
    %c0_13 = arith.constant 0 : index
    %c0_14 = arith.constant 0 : index
    %17 = vector.load %arg6[%c0_13, %c0_14] : memref<136x256xf32, #tpu.memory_space<vmem>>, vector<128x256xf32>
    %c128_15 = arith.constant 128 : index
    %c0_16 = arith.constant 0 : index
    %18 = vector.load %arg6[%c128_15, %c0_16] : memref<136x256xf32, #tpu.memory_space<vmem>>, vector<1x256xf32>
    %cst_17 = arith.constant dense<0.000000e+00> : vector<8x256xf32>
    %19 = tpu.matmul %16, %17, %cst_17 {dimension_numbers = #tpu.dot_dimension_numbers<[1], [0], [0], [1], [0, 0, 1, 1], [], []>} : vector<8x128xf32>, vector<128x256xf32>, vector<8x256xf32> -> vector<8x256xf32>
    %20 = vector.broadcast %18 : vector<1x256xf32> to vector<8x256xf32>
    %21 = arith.addf %19, %20 : vector<8x256xf32>
    %cst_18 = arith.constant 0.000000e+00 : f32
    %22 = vector.broadcast %cst_18 : f32 to vector<8x256xf32>
    %23 = arith.maximumf %21, %22 : vector<8x256xf32>
    %24 = vector.extract_strided_slice %23 {offsets = [0, 0], sizes = [8, 128], strides = [1, 1]} : vector<8x256xf32> to vector<8x128xf32>
    %25 = vector.extract_strided_slice %23 {offsets = [0, 128], sizes = [8, 128], strides = [1, 1]} : vector<8x256xf32> to vector<8x128xf32>
    %c0_19 = arith.constant 0 : index
    %c0_20 = arith.constant 0 : index
    %26 = vector.load %arg3[%c0_19, %c0_20] : memref<8x128xf32, #tpu.memory_space<vmem>>, vector<8x128xf32>
    %cst_21 = arith.constant 5.000000e-01 : f32
    %27 = vector.broadcast %cst_21 : f32 to vector<8x128xf32>
    %28 = arith.mulf %27, %25 : vector<8x128xf32>
    %29 = math.exp %28 : vector<8x128xf32>
    %30 = arith.mulf %26, %29 : vector<8x128xf32>
    %31 = arith.addf %24, %30 : vector<8x128xf32>
    %c136 = arith.constant 136 : index
    %c0_22 = arith.constant 0 : index
    %32 = vector.load %arg5[%c136, %c0_22] : memref<408x128xf32, #tpu.memory_space<vmem>>, vector<128x128xf32>
    %c264 = arith.constant 264 : index
    %c0_23 = arith.constant 0 : index
    %33 = vector.load %arg5[%c264, %c0_23] : memref<408x128xf32, #tpu.memory_space<vmem>>, vector<1x128xf32>
    %cst_24 = arith.constant dense<0.000000e+00> : vector<8x128xf32>
    %34 = tpu.matmul %31, %32, %cst_24 {dimension_numbers = #tpu.dot_dimension_numbers<[1], [0], [0], [1], [0, 0, 1, 1], [], []>} : vector<8x128xf32>, vector<128x128xf32>, vector<8x128xf32> -> vector<8x128xf32>
    %35 = vector.broadcast %33 : vector<1x128xf32> to vector<8x128xf32>
    %36 = arith.addf %34, %35 : vector<8x128xf32>
    %cst_25 = arith.constant 0.000000e+00 : f32
    %37 = vector.broadcast %cst_25 : f32 to vector<8x128xf32>
    %38 = arith.maximumf %36, %37 : vector<8x128xf32>
    %c272 = arith.constant 272 : index
    %c0_26 = arith.constant 0 : index
    %39 = vector.load %arg5[%c272, %c0_26] : memref<408x128xf32, #tpu.memory_space<vmem>>, vector<128x128xf32>
    %c400 = arith.constant 400 : index
    %c0_27 = arith.constant 0 : index
    %40 = vector.load %arg5[%c400, %c0_27] : memref<408x128xf32, #tpu.memory_space<vmem>>, vector<1x128xf32>
    %cst_28 = arith.constant dense<0.000000e+00> : vector<8x128xf32>
    %41 = tpu.matmul %38, %39, %cst_28 {dimension_numbers = #tpu.dot_dimension_numbers<[1], [0], [0], [1], [0, 0, 1, 1], [], []>} : vector<8x128xf32>, vector<128x128xf32>, vector<8x128xf32> -> vector<8x128xf32>
    %42 = vector.broadcast %40 : vector<1x128xf32> to vector<8x128xf32>
    %43 = arith.addf %41, %42 : vector<8x128xf32>
    %cst_29 = arith.constant 0.000000e+00 : f32
    %44 = vector.broadcast %cst_29 : f32 to vector<8x128xf32>
    %45 = arith.maximumf %43, %44 : vector<8x128xf32>
    %c0_30 = arith.constant 0 : index
    %c0_31 = arith.constant 0 : index
    %c0_32 = arith.constant 0 : index
    %46 = vector.load %arg7[%c0_30, %c0_31, %c0_32] : memref<1x136x128xf32, #tpu.memory_space<vmem>>, vector<1x128x128xf32>
    %47 = vector.shape_cast %46 : vector<1x128x128xf32> to vector<128x128xf32>
    %c0_33 = arith.constant 0 : index
    %c128_34 = arith.constant 128 : index
    %c0_35 = arith.constant 0 : index
    %48 = vector.load %arg7[%c0_33, %c128_34, %c0_35] : memref<1x136x128xf32, #tpu.memory_space<vmem>>, vector<1x1x128xf32>
    %49 = vector.shape_cast %48 : vector<1x1x128xf32> to vector<1x128xf32>
    %cst_36 = arith.constant dense<0.000000e+00> : vector<8x128xf32>
    %50 = tpu.matmul %45, %47, %cst_36 {dimension_numbers = #tpu.dot_dimension_numbers<[1], [0], [0], [1], [0, 0, 1, 1], [], []>} : vector<8x128xf32>, vector<128x128xf32>, vector<8x128xf32> -> vector<8x128xf32>
    %51 = vector.broadcast %49 : vector<1x128xf32> to vector<8x128xf32>
    %52 = arith.addf %50, %51 : vector<8x128xf32>
    %cst_37 = arith.constant 0.000000e+00 : f32
    %53 = vector.broadcast %cst_37 : f32 to vector<8x128xf32>
    %54 = arith.maximumf %52, %53 : vector<8x128xf32>
    %55 = tpu.concatenate %54, %31, %24, %25 in 1 : vector<8x128xf32>, vector<8x128xf32>, vector<8x128xf32>, vector<8x128xf32> -> vector<8x512xf32>
    %c0_38 = arith.constant 0 : index
    %c0_39 = arith.constant 0 : index
    %56 = vector.load %arg8[%c0_38, %c0_39] : memref<8x512xf32, #tpu.memory_space<vmem>>, vector<8x512xf32>
    tpu.vector_store %arg8[%c0_38, %c0_39], %55 {strides = array<i32>} : memref<8x512xf32, #tpu.memory_space<vmem>>, vector<8x512xf32>,
    return
  }
  func.func @transform_0(%arg0: i32, %arg1: memref<2xi32, #tpu.memory_space<smem>>) -> (i32, i32) {
    %c0_i32 = arith.constant 0 : i32
    %c0_i32_0 = arith.constant 0 : i32
    %c0_i32_1 = arith.constant 0 : i32
    return %c0_i32, %c0_i32_0 : i32, i32
  }
  func.func @transform_1(%arg0: i32, %arg1: memref<2xi32, #tpu.memory_space<smem>>) -> (i32, i32) {
    %c0_i32 = arith.constant 0 : i32
    %c0_i32_0 = arith.constant 0 : i32
    %c0_i32_1 = arith.constant 0 : i32
    return %c0_i32, %c0_i32_0 : i32, i32
  }
  func.func @transform_2(%arg0: i32, %arg1: memref<2xi32, #tpu.memory_space<smem>>) -> (i32, i32, i32) {
    %c0 = arith.constant 0 : index
    %0 = memref.load %arg1[%c0] : memref<2xi32, #tpu.memory_space<smem>>
    %c0_i32 = arith.constant 0 : i32
    %c0_i32_0 = arith.constant 0 : i32
    %c0_i32_1 = arith.constant 0 : i32
    return %0, %c0_i32, %c0_i32_0 : i32, i32, i32
  }
  func.func @transform_3(%arg0: i32, %arg1: memref<2xi32, #tpu.memory_space<smem>>) -> (i32, i32) {
    %c0_i32 = arith.constant 0 : i32
    %c0_i32_0 = arith.constant 0 : i32
    %c0_i32_1 = arith.constant 0 : i32
    return %c0_i32, %c0_i32_0 : i32, i32
  }
  func.func @transform_4(%arg0: i32, %arg1: memref<2xi32, #tpu.memory_space<smem>>) -> (i32, i32) {
    %c0_i32 = arith.constant 0 : i32
    %c0_i32_0 = arith.constant 0 : i32
    %c0_i32_1 = arith.constant 0 : i32
    return %c0_i32, %c0_i32_0 : i32, i32
  }
  func.func @transform_5(%arg0: i32, %arg1: memref<2xi32, #tpu.memory_space<smem>>) -> (i32, i32, i32) {
    %c1 = arith.constant 1 : index
    %0 = memref.load %arg1[%c1] : memref<2xi32, #tpu.memory_space<smem>>
    %c0_i32 = arith.constant 0 : i32
    %c0_i32_0 = arith.constant 0 : i32
    %c0_i32_1 = arith.constant 0 : i32
    return %0, %c0_i32, %c0_i32_0 : i32, i32, i32
  }
  func.func @transform_6(%arg0: i32, %arg1: memref<2xi32, #tpu.memory_space<smem>>) -> (i32, i32) {
    %c0_i32 = arith.constant 0 : i32
    %c0_i32_0 = arith.constant 0 : i32
    %c0_i32_1 = arith.constant 0 : i32
    return %c0_i32, %c0_i32_0 : i32, i32
  }
}

</mosaic_0001>

<bundles_post_ra>
// kernel: tpu_custom_call.1
= control target key start
LH: loop header
LB: loop body
LE: loop exit
PB: predicated region body
PF: predicated region fallthrough
CT: control target
= control target key end

     0   :  { %s660_s27 = smov [#allocation3]   ;;  %s757_s0 = inlined_call_operand.hbm [shape: s32[2], index: 0, kind: input, shape index: {}]   ;;  %s758_s1 = inlined_call_operand.hbm [shape: f32[8,128], index: 1, kind: input, shape index: {}]   ;;  %s759_s2 = inlined_call_operand.hbm [shape: f32[8,128], index: 2, kind: input, shape index: {}]   ;;  %s760_s3 = inlined_call_operand.hbm [shape: f32[2,136,128], index: 3, kind: input, shape index: {}]   ;;  %s761_s4 = inlined_call_operand.hbm [shape: f32[408,128], index: 4, kind: input, shape index: {}]   ;;  %s762_s5 = inlined_call_operand.hbm [shape: f32[136,256], index: 5, kind: input, shape index: {}]   ;;  %s763_s6 = inlined_call_operand.hbm [shape: f32[2,136,128], index: 6, kind: input, shape index: {}]   ;;  %s764_s7 = inlined_call_operand.hbm [shape: f32[8,512], index: 7, kind: output, shape index: {}]  }
   0x1   :  { %s13_s26 = sshll.u32 %s757_s0, 4  ;;  %s14_s26 = int_to_ptr.hbm [resolvable:$true] %s13_s26 }
   0x2   :  { %16 = dma.hbm_to_smem %s14_s26, 16, %s660_s27, [#allocation2] }
   0x3   :  { %648 = dma.done.wait [#allocation2], 16 }
   0x4   :  { %649 = vsyncadd [#allocation2], 4294967280 }
   0x5   :  { %19 = sfence }
   0x6   :  { %20 = vsyncpa [#allocation5], 0 }
   0x7   :  { %21 = vsyncpa [#allocation8], 0 }
   0x8   :  { %22 = vsyncpa [#allocation11], 0 }
   0x9   :  { %23 = vsyncpa [#allocation14], 0  ;;  %s41_s30 = sshll.u32 %s759_s2, 4  ;;  %s42_s30 = int_to_ptr.hbm [resolvable:$true] %s41_s30 }
   0xa   :  { %24 = vsyncpa [#allocation6], 0  ;;  %s661_s8 = smov [#allocation7]   ;;  %s68_s11 = sshll.u32 %s761_s4, 4  ;;  %s69_s11 = int_to_ptr.hbm [resolvable:$true] %s68_s11 }
   0xb   :  { %s43_s9 = sshll.u32 %s661_s8, 4  ;;  %s662_s12 = smov [#allocation10]   ;;  %s44_s9 = int_to_ptr.vmem [resolvable:$true] %s43_s9 }
   0xc   :  { %46 = dma.hbm_to_vmem [thread:$0]  %s42_s30, 128, %s44_s9, [#allocation8]  }
   0xd   :  { %s70_s13 = sshll.u32 %s662_s12, 4  ;;  %s30_s16 = sshll.u32 %s758_s1, 4  ;;  %s71_s13 = int_to_ptr.vmem [resolvable:$true] %s70_s13  ;;  %s31_s16 = int_to_ptr.hbm [resolvable:$true] %s30_s16 }
   0xe   :  { %s663_s2 = smov 128   ;;  %s664_s17 = smov 8  }
   0xf   :  { %76 = dma.hbm_to_vmem [thread:$0]  %s69_s11, 6528, %s71_s13, [#allocation11], %s663_s2, %s663_s2, %s664_s17  }
  0x10   :  { %s49_s18 = sld [smem:[#allocation3]]  ;;  %s665_s19 = smov [#allocation4]  }
  0x11   :  { %s32_s20 = sshll.u32 %s665_s19, 4  ;;  %s666_s4 = smov [#allocation9]   ;;  %s33_s20 = int_to_ptr.vmem [resolvable:$true] %s32_s20 }
  0x12   :  { %s57_s21 = sshll.u32 %s666_s4, 4  ;;  %s81_s1 = sshll.u32 %s762_s5, 4  ;;  %s58_s21 = int_to_ptr.vmem [resolvable:$true] %s57_s21  ;;  %s82_s1 = int_to_ptr.hbm [resolvable:$true] %s81_s1 }
  0x13   :  { %35 = dma.hbm_to_vmem [thread:$0]  %s31_s16, 128, %s33_s20, [#allocation5]  }
  0x14   :  { %s667_s25 = smov [#allocation12]   ;;  %s445_s8 = sld [smem:[#allocation3 + $0x1]] }
  0x15   :  { %s83_s26 = sshll.u32 %s667_s25, 4  ;;  %s556_s5 = scalar_lea.hbm %s760_s3, 272  ;;  %s84_s26 = int_to_ptr.vmem [resolvable:$true] %s83_s26 }
  0x16   :  { %s447_s24 = smul.u32 136, %s49_s18 }
  0x18   :  { %s54_s29 = scalar_lea.hbm %s760_s3, %s447_s24 }
  0x19   :  { %s55_s30 = sshll.u32 %s54_s29, 4  ;;  %s56_s30 = int_to_ptr.hbm [resolvable:$true] %s55_s30 }
  0x1a   :  { %s552_s9 = sshra.s32 %s56_s30, 4  ;;  %s553_s9 = int_to_ptr.hbm [resolvable:$true] %s552_s9 }
  0x1b   :  { %s554_s0 = scalar_lea.hbm %s553_s9, 136  ;;  %p557_p1 = scmp.lt.s32.totalorder %s553_s9, %s760_s3 }
  0x1c   :  { %p555_p0 = scmp.ne.s32.totalorder %s553_s9, %s554_s0  ;;  %p558_p2 = scmp.lt.s32.totalorder %s556_s5, %s554_s0 }
  0x1e   :  { %p559_p3 = por %p558_p2, %p557_p1 }
  0x20   :  { %p560_p4 = pnand %p559_p3, %p555_p0 }
  0x22   :  { %563 = shalt.err (!%p560_p4)
}
  0x23   :  { %63 = dma.hbm_to_vmem [thread:$0]  %s56_s30, 2176, %s58_s21, [#allocation8], %s663_s2, %s663_s2, %s664_s17  }
  0x24   :  { %s668_s14 = smov 256   ;;  %s669_s15 = smov 16  }
  0x25   :  { %89 = dma.hbm_to_vmem [thread:$0]  %s82_s1, 4352, %s84_s26, [#allocation11], %s668_s14, %s668_s14, %s669_s15  }
  0x26   :  { %s670_s16 = smov [#allocation13]   ;;  %s448_s19 = smul.u32 136, %s445_s8 }
  0x27   :  { %s100_s18 = sshll.u32 %s670_s16, 4  ;;  %s604_s21 = scalar_lea.hbm %s763_s6, 272  ;;  %s101_s18 = int_to_ptr.vmem [resolvable:$true] %s100_s18 }
  0x28   :  { %s97_s22 = scalar_lea.hbm %s763_s6, %s448_s19 }
  0x29   :  { %s98_s3 = sshll.u32 %s97_s22, 4  ;;  %s99_s3 = int_to_ptr.hbm [resolvable:$true] %s98_s3 }
  0x2a   :  { %s600_s23 = sshra.s32 %s99_s3, 4  ;;  %s601_s23 = int_to_ptr.hbm [resolvable:$true] %s600_s23 }
  0x2b   :  { %s602_s24 = scalar_lea.hbm %s601_s23, 136  ;;  %p605_p6 = scmp.lt.s32.totalorder %s601_s23, %s763_s6 }
  0x2c   :  { %p603_p5 = scmp.ne.s32.totalorder %s601_s23, %s602_s24  ;;  %p606_p7 = scmp.lt.s32.totalorder %s604_s21, %s602_s24 }
  0x2e   :  { %p607_p8 = por %p606_p7, %p605_p6 }
  0x30   :  { %p608_p9 = pnand %p607_p8, %p603_p5 }
  0x32   :  { %611 = shalt.err (!%p608_p9)
}
  0x33   :  { %106 = dma.hbm_to_vmem [thread:$0]  %s99_s3, 2176, %s101_s18, [#allocation14], %s663_s2, %s663_s2, %s664_s17  }
  0x34   :  { %650 = dma.done.wait [#allocation5], 128  }
  0x35   :  { %651 = vsyncadd [#allocation5], 4294967168 }
  0x36   :  { %652 = dma.done.wait [#allocation8], 2304  }
  0x37   :  { %653 = vsyncadd [#allocation8], 4294964992 }
  0x38   :  { %654 = dma.done.wait [#allocation11], 10880  }
  0x39   :  { %655 = vsyncadd [#allocation11], 4294956416 }
  0x3a   :  { %656 = dma.done.wait [#allocation14], 2176  }
  0x3b   :  { %657 = vsyncadd [#allocation14], 4294965120  ;;  %v149_v0 = vld [vmem:[#allocation9 + $0x78] sm:$0xff]  ;;  %v148_v1 = vld [vmem:[#allocation9 + $0x70] sm:$0xff]  ;;  %s671_s6 = smov [#allocation15]   ;;  %s427_s29 = sshll.u32 %s764_s7, 4  ;;  %s428_s29 = int_to_ptr.hbm [resolvable:$true] %s427_s29 }
  0x3c   :  { %152 = vmatpush.msra.mxu0 %v149_v0  ;;  %v147_v2 = vld [vmem:[#allocation9 + $0x68] sm:$0xff]  ;;  %v146_v3 = vld [vmem:[#allocation9 + $0x60] sm:$0xff]  ;;  %v145_v5 = vld [vmem:[#allocation9 + $0x58] sm:$0xff]  ;;  %s425_s2 = sshll.u32 %s671_s6, 4  ;;  %s426_s2 = int_to_ptr.vmem [resolvable:$true] %s425_s2 }
  0x3d   :  { %v188_v4 = vld [vmem:[#allocation10 + $0x78] sm:$0xff]  ;;  %v187_v6 = vld [vmem:[#allocation10 + $0x70] sm:$0xff]  ;;  %v186_v7 = vld [vmem:[#allocation10 + $0x68] sm:$0xff] }
  0x3e   :  { %153 = vmatpush.msra.mxu0 %v148_v1  ;;  %191 = vmatpush.msra.mxu1 %v188_v4  ;;  %v144_v8 = vld [vmem:[#allocation9 + $0x50] sm:$0xff]  ;;  %v143_v9 = vld [vmem:[#allocation9 + $0x48] sm:$0xff]  ;;  %v184_v11 = vld [vmem:[#allocation10 + $0x58] sm:$0xff] }
  0x3f   :  { %v185_v10 = vld [vmem:[#allocation10 + $0x60] sm:$0xff]  ;;  %v142_v12 = vld [vmem:[#allocation9 + $0x40] sm:$0xff]  ;;  %v183_v13 = vld [vmem:[#allocation10 + $0x50] sm:$0xff] }
  0x40   :  { %154 = vmatpush.msra.mxu0 %v147_v2  ;;  %192 = vmatpush.msra.mxu1 %v187_v6  ;;  %v141_v14 = vld [vmem:[#allocation9 + $0x38] sm:$0xff]  ;;  %v182_v15 = vld [vmem:[#allocation10 + $0x48] sm:$0xff]  ;;  %v181_v17 = vld [vmem:[#allocation10 + $0x40] sm:$0xff] }
  0x41   :  { %v140_v16 = vld [vmem:[#allocation9 + $0x30] sm:$0xff]  ;;  %v139_v18 = vld [vmem:[#allocation9 + $0x28] sm:$0xff]  ;;  %v180_v19 = vld [vmem:[#allocation10 + $0x38] sm:$0xff] }
  0x42   :  { %155 = vmatpush.msra.mxu0 %v146_v3  ;;  %193 = vmatpush.msra.mxu1 %v186_v7  ;;  %v138_v20 = vld [vmem:[#allocation9 + $0x20] sm:$0xff]  ;;  %v179_v21 = vld [vmem:[#allocation10 + $0x30] sm:$0xff]  ;;  %v178_v23 = vld [vmem:[#allocation10 + $0x28] sm:$0xff] }
  0x43   :  { %v137_v22 = vld [vmem:[#allocation9 + $0x18] sm:$0xff]  ;;  %v136_v24 = vld [vmem:[#allocation9 + $0x10] sm:$0xff]  ;;  %v177_v25 = vld [vmem:[#allocation10 + $0x20] sm:$0xff] }
  0x44   :  { %156 = vmatpush.msra.mxu0 %v145_v5  ;;  %194 = vmatpush.msra.mxu1 %v185_v10  ;;  %v135_v26 = vld [vmem:[#allocation9 + $0x8] sm:$0xff]  ;;  %v176_v27 = vld [vmem:[#allocation10 + $0x18] sm:$0xff]  ;;  %v133_v29 = vld [vmem:[#allocation4] sm:$0xff] }
  0x45   :  { %v134_v28 = vld [vmem:[#allocation9] sm:$0xff]  ;;  %v175_v30 = vld [vmem:[#allocation10 + $0x10] sm:$0xff]  ;;  %v174_v31 = vld [vmem:[#allocation10 + $0x8] sm:$0xff] }
  0x46   :  { %157 = vmatpush.msra.mxu0 %v144_v8  ;;  %195 = vmatpush.msra.mxu1 %v184_v11  ;;  %v173_v32 = vld [vmem:[#allocation10] sm:$0xff]  ;;  %v242_v33 = vld [vmem:[#allocation12 + $0xf0] sm:$0xff]  ;;  %v243_v34 = vld [vmem:[#allocation12 + $0xf8] sm:$0xff] }
  0x47   :  { %v240_v35 = vld [vmem:[#allocation12 + $0xe0] sm:$0xff]  ;;  %251 = vmatpush.msra.mxu2 %v242_v33  ;;  %271 = vmatpush.msra.mxu3 %v243_v34  ;;  %v241_v36 = vld [vmem:[#allocation12 + $0xe8] sm:$0xff]  ;;  %v238_v37 = vld [vmem:[#allocation12 + $0xd0] sm:$0xff] }
  0x48   :  { %158 = vmatpush.msra.mxu0 %v143_v9  ;;  %196 = vmatpush.msra.mxu1 %v183_v13  ;;  %v239_v38 = vld [vmem:[#allocation12 + $0xd8] sm:$0xff]  ;;  %v236_v39 = vld [vmem:[#allocation12 + $0xc0] sm:$0xff]  ;;  %v237_v40 = vld [vmem:[#allocation12 + $0xc8] sm:$0xff] }
  0x49   :  { %252 = vmatpush.msra.mxu2 %v240_v35  ;;  %272 = vmatpush.msra.mxu3 %v241_v36  ;;  %v234_v41 = vld [vmem:[#allocation12 + $0xb0] sm:$0xff]  ;;  %v235_v42 = vld [vmem:[#allocation12 + $0xb8] sm:$0xff]  ;;  %v232_v43 = vld [vmem:[#allocation12 + $0xa0] sm:$0xff] }
  0x4a   :  { %159 = vmatpush.msra.mxu0 %v142_v12  ;;  %197 = vmatpush.msra.mxu1 %v182_v15  ;;  %v233_v44 = vld [vmem:[#allocation12 + $0xa8] sm:$0xff]  ;;  %v230_v45 = vld [vmem:[#allocation12 + $0x90] sm:$0xff]  ;;  %v231_v46 = vld [vmem:[#allocation12 + $0x98] sm:$0xff] }
  0x4b   :  { %253 = vmatpush.msra.mxu2 %v238_v37  ;;  %273 = vmatpush.msra.mxu3 %v239_v38  ;;  %v228_v47 = vld [vmem:[#allocation12 + $0x80] sm:$0xff]  ;;  %v229_v48 = vld [vmem:[#allocation12 + $0x88] sm:$0xff]  ;;  %v226_v49 = vld [vmem:[#allocation12 + $0x70] sm:$0xff] }
  0x4c   :  { %160 = vmatpush.msra.mxu0 %v141_v14  ;;  %198 = vmatpush.msra.mxu1 %v181_v17  ;;  %v227_v50 = vld [vmem:[#allocation12 + $0x78] sm:$0xff]  ;;  %v224_v51 = vld [vmem:[#allocation12 + $0x60] sm:$0xff]  ;;  %v225_v52 = vld [vmem:[#allocation12 + $0x68] sm:$0xff] }
  0x4d   :  { %254 = vmatpush.msra.mxu2 %v236_v39  ;;  %274 = vmatpush.msra.mxu3 %v237_v40  ;;  %v222_v53 = vld [vmem:[#allocation12 + $0x50] sm:$0xff]  ;;  %v223_v54 = vld [vmem:[#allocation12 + $0x58] sm:$0xff]  ;;  %v220_v55 = vld [vmem:[#allocation12 + $0x40] sm:$0xff] }
  0x4e   :  { %161 = vmatpush.msra.mxu0 %v140_v16  ;;  %199 = vmatpush.msra.mxu1 %v180_v19  ;;  %v221_v56 = vld [vmem:[#allocation12 + $0x48] sm:$0xff]  ;;  %v218_v57 = vld [vmem:[#allocation12 + $0x30] sm:$0xff]  ;;  %v219_v58 = vld [vmem:[#allocation12 + $0x38] sm:$0xff] }
  0x4f   :  { %255 = vmatpush.msra.mxu2 %v234_v41  ;;  %275 = vmatpush.msra.mxu3 %v235_v42  ;;  %v461_v59 = vld [vmem:[#allocation9 + $0x80] ss:$0 sm:$0xff]  ;;  %v217_v0 = vld [vmem:[#allocation12 + $0x28] sm:$0xff]  ;;  %v214_v1 = vld [vmem:[#allocation12 + $0x10] sm:$0xff] }
  0x50   :  { %162 = vmatpush.msra.mxu0 %v139_v18  ;;  %200 = vmatpush.msra.mxu1 %v179_v21  ;;  %v216_v63 = vld [vmem:[#allocation12 + $0x20] sm:$0xff]  ;;  %v215_v2 = vld [vmem:[#allocation12 + $0x18] sm:$0xff]  ;;  %v213_v4 = vld [vmem:[#allocation12 + $0x8] sm:$0xff] }
  0x51   :  { %256 = vmatpush.msra.mxu2 %v232_v43  ;;  %276 = vmatpush.msra.mxu3 %v233_v44  ;;  %v212_v3 = vld [vmem:[#allocation12] sm:$0xff]  ;;  %v314_v5 = vld [vmem:[#allocation10 + $0x100] sm:$0xff]  ;;  %v312_v7 = vld [vmem:[#allocation10 + $0xf0] sm:$0xff] }
  0x52   :  { %163 = vmatpush.msra.mxu0 %v138_v20  ;;  %201 = vmatpush.msra.mxu1 %v178_v23  ;;  %v313_v6 = vld [vmem:[#allocation10 + $0xf8] sm:$0xff]  ;;  %v311_v8 = vld [vmem:[#allocation10 + $0xe8] sm:$0xff]  ;;  %v310_v9 = vld [vmem:[#allocation10 + $0xe0] sm:$0xff] }
  0x53   :  { %257 = vmatpush.msra.mxu2 %v230_v45  ;;  %277 = vmatpush.msra.mxu3 %v231_v46  ;;  %v309_v10 = vld [vmem:[#allocation10 + $0xd8] sm:$0xff]  ;;  %v462_v11 = vld [vmem:[#allocation10 + $0x80] ss:$0 sm:$0xff]  ;;  %v308_v15 = vld [vmem:[#allocation10 + $0xd0] sm:$0xff] }
  0x54   :  { %164 = vmatpush.msra.mxu0 %v137_v22  ;;  %202 = vmatpush.msra.mxu1 %v177_v25  ;;  %v307_v16 = vld [vmem:[#allocation10 + $0xc8] sm:$0xff]  ;;  %v306_v17 = vld [vmem:[#allocation10 + $0xc0] sm:$0xff]  ;;  %v305_v18 = vld [vmem:[#allocation10 + $0xb8] sm:$0xff] }
  0x55   :  { %258 = vmatpush.msra.mxu2 %v228_v47  ;;  %278 = vmatpush.msra.mxu3 %v229_v48  ;;  %v304_v19 = vld [vmem:[#allocation10 + $0xb0] sm:$0xff]  ;;  %v303_v20 = vld [vmem:[#allocation10 + $0xa8] sm:$0xff]  ;;  %v302_v21 = vld [vmem:[#allocation10 + $0xa0] sm:$0xff] }
  0x56   :  { %165 = vmatpush.msra.mxu0 %v136_v24  ;;  %203 = vmatpush.msra.mxu1 %v176_v27  ;;  %v301_v22 = vld [vmem:[#allocation10 + $0x98] sm:$0xff]  ;;  %v300_v23 = vld [vmem:[#allocation10 + $0x90] sm:$0xff]  ;;  %v299_v24 = vld [vmem:[#allocation10 + $0x88] sm:$0xff] }
  0x57   :  { %259 = vmatpush.msra.mxu2 %v226_v49  ;;  %279 = vmatpush.msra.mxu3 %v227_v50  ;;  %v353_v25 = vld [vmem:[#allocation10 + $0x188] sm:$0xff]  ;;  %v351_v27 = vld [vmem:[#allocation10 + $0x178] sm:$0xff]  ;;  %v346_v37 = vld [vmem:[#allocation10 + $0x150] sm:$0xff] }
  0x58   :  { %166 = vmatpush.msra.mxu0 %v135_v26  ;;  %204 = vmatpush.msra.mxu1 %v175_v30  ;;  %v352_v26 = vld [vmem:[#allocation10 + $0x180] sm:$0xff]  ;;  %v349_v30 = vld [vmem:[#allocation10 + $0x168] sm:$0xff]  ;;  %v347_v34 = vld [vmem:[#allocation10 + $0x158] sm:$0xff] }
  0x59   :  { %260 = vmatpush.msra.mxu2 %v224_v51  ;;  %280 = vmatpush.msra.mxu3 %v225_v52  ;;  %v345_v40 = vld [vmem:[#allocation10 + $0x148] sm:$0xff]  ;;  %v344_v43 = vld [vmem:[#allocation10 + $0x140] sm:$0xff]  ;;  %v343_v45 = vld [vmem:[#allocation10 + $0x138] sm:$0xff] }
  0x5a   :  { %167 = vmatpush.msra.mxu0 %v134_v28  ;;  %205 = vmatpush.msra.mxu1 %v174_v31  ;;  %v350_v28 = vld [vmem:[#allocation10 + $0x170] sm:$0xff]  ;;  %v348_v31 = vld [vmem:[#allocation10 + $0x160] sm:$0xff]  ;;  %v341_v48 = vld [vmem:[#allocation10 + $0x128] sm:$0xff] }
  0x5b   :  { %168 = vmatmul.f32.vlgmr.msra.gmra.mxu0 %v133_v29  ;;  %261 = vmatpush.msra.mxu2 %v222_v53  ;;  %v245_v29 = vld [vmem:[#allocation12 + $0x100] ss:$8 sm:$0x3]  ;;  %v342_v47 = vld [vmem:[#allocation10 + $0x130] sm:$0xff] }
  0x5c   :  { %206 = vmatpush.msra.mxu1 %v173_v32  ;;  %281 = vmatpush.msra.mxu3 %v223_v54  ;;  %v247_v32 = vperm.slane %v245_v29, 0  ;;  %v248_v33 = vperm.slane %v245_v29, 1  ;;  %v293_v49 = vld [vmem:[#allocation7] sm:$0xff]  ;;  %v340_v53 = vld [vmem:[#allocation10 + $0x120] sm:$0xff]  ;;  %v339_v54 = vld [vmem:[#allocation10 + $0x118] sm:$0xff] }
  0x5d   :  { %262 = vmatpush.msra.mxu2 %v220_v55  ;;  %317 = vmatpush.msrb.mxu0 %v314_v5  ;;  %v338_v55 = vld [vmem:[#allocation10 + $0x110] sm:$0xff]  ;;  %v463_v5 = vld [vmem:[#allocation10 + $0x108] ss:$0 sm:$0xff] }
  0x5e   :  { %282 = vmatpush.msra.mxu3 %v221_v56  ;;  %356 = vmatpush.msrb.mxu1 %v353_v25  ;;  %v392_v56 = vld [vmem:[#allocation13 + $0x78] sm:$0xff] }
  0x5f   :  { %263 = vmatpush.msra.mxu2 %v218_v57  ;;  %318 = vmatpush.msrb.mxu0 %v313_v6  ;;  %v391_v57 = vld [vmem:[#allocation13 + $0x70] sm:$0xff] }
  0x60   :  { %283 = vmatpush.msra.mxu3 %v219_v58  ;;  %357 = vmatpush.msrb.mxu1 %v352_v26  ;;  %v390_v58 = vld [vmem:[#allocation13 + $0x68] sm:$0xff] }
  0x61   :  { %264 = vmatpush.msra.mxu2 %v216_v63  ;;  %319 = vmatpush.msrb.mxu0 %v312_v7  ;;  %v385_v63 = vld [vmem:[#allocation13 + $0x40] sm:$0xff] }
  0x62   :  { %284 = vmatpush.msra.mxu3 %v217_v0  ;;  %358 = vmatpush.msrb.mxu1 %v351_v27  ;;  %v384_v0 = vld [vmem:[#allocation13 + $0x38] sm:$0xff] }
  0x63   :  { %265 = vmatpush.msra.mxu2 %v214_v1  ;;  %320 = vmatpush.msrb.mxu0 %v311_v8  ;;  %v383_v1 = vld [vmem:[#allocation13 + $0x30] sm:$0xff] }
  0x64   :  { %285 = vmatpush.msra.mxu3 %v215_v2  ;;  %359 = vmatpush.msrb.mxu1 %v350_v28  ;;  %v382_v2 = vld [vmem:[#allocation13 + $0x28] sm:$0xff] }
  0x65   :  { %266 = vmatpush.msra.mxu2 %v212_v3  ;;  %321 = vmatpush.msrb.mxu0 %v310_v9  ;;  %v381_v3 = vld [vmem:[#allocation13 + $0x20] sm:$0xff]  ;;  %v379_v9 = vld [vmem:[#allocation13 + $0x10] sm:$0xff] }
  0x66   :  { %286 = vmatpush.msra.mxu3 %v213_v4  ;;  %360 = vmatpush.msrb.mxu1 %v349_v30  ;;  %v380_v4 = vld [vmem:[#allocation13 + $0x18] sm:$0xff] }
  0x67   :  { %322 = vmatpush.msrb.mxu0 %v309_v10  ;;  %395 = vmatpush.msrb.mxu2 %v392_v56  ;;  %v378_v10 = vld [vmem:[#allocation13 + $0x8] sm:$0xff] }
  0x68   :  { %361 = vmatpush.msrb.mxu1 %v348_v31 }
  0x69   :  { %323 = vmatpush.msrb.mxu0 %v308_v15  ;;  %396 = vmatpush.msrb.mxu2 %v391_v57 }
  0x6a   :  { %362 = vmatpush.msrb.mxu1 %v347_v34 }
  0x6b   :  { %324 = vmatpush.msrb.mxu0 %v307_v16  ;;  %397 = vmatpush.msrb.mxu2 %v390_v58  ;;  %v465_v16 = vld [vmem:[#allocation13 + $0x80] ss:$0 sm:$0xff] }
  0x6c   :  { %363 = vmatpush.msrb.mxu1 %v346_v37 }
  0x6d   :  { %325 = vmatpush.msrb.mxu0 %v306_v17 }
  0x6e   :  { %364 = vmatpush.msrb.mxu1 %v345_v40 }
  0x6f   :  { %326 = vmatpush.msrb.mxu0 %v305_v18 }
  0x70   :  { %365 = vmatpush.msrb.mxu1 %v344_v43 }
  0x71   :  { %327 = vmatpush.msrb.mxu0 %v304_v19 }
  0x72   :  { %366 = vmatpush.msrb.mxu1 %v343_v45 }
  0x73   :  { %328 = vmatpush.msrb.mxu0 %v303_v20 }
  0x74   :  { %367 = vmatpush.msrb.mxu1 %v342_v47 }
  0x75   :  { %329 = vmatpush.msrb.mxu0 %v302_v21 }
  0x76   :  { %368 = vmatpush.msrb.mxu1 %v341_v48 }
  0x77   :  { %330 = vmatpush.msrb.mxu0 %v301_v22 }
  0x78   :  { %369 = vmatpush.msrb.mxu1 %v340_v53 }
  0x79   :  { %331 = vmatpush.msrb.mxu0 %v300_v23 }
  0x7a   :  { %370 = vmatpush.msrb.mxu1 %v339_v54 }
  0x7b   :  { %332 = vmatpush.msrb.mxu0 %v299_v24 }
  0x7c   :  { %371 = vmatpush.msrb.mxu1 %v338_v55 }
  0xd8   :  { %v169_v60 = vpop.f32.mrf.mxu0 }
  0xd9   :  { %v170_v61 = vadd.f32 %v461_v59, %v169_v60  ;;  %v389_v59 = vld [vmem:[#allocation13 + $0x60] sm:$0xff]  ;;  %v388_v60 = vld [vmem:[#allocation13 + $0x58] sm:$0xff] }
  0xda   :  { %398 = vmatpush.msrb.mxu2 %v389_v59 }
  0xdb   :  { %v172_v62 = vmax.f32 %v170_v61, 0.0  ;;  %v387_v61 = vld [vmem:[#allocation13 + $0x50] sm:$0xff] }
  0xdc   :  { %399 = vmatpush.msrb.mxu2 %v388_v60 }
  0xdd   :  { %207 = vmatmul.f32.vlgmr.msra.gmra.mxu1 %v172_v62  ;;  %v386_v62 = vld [vmem:[#allocation13 + $0x48] sm:$0xff] }
  0xde   :  { %400 = vmatpush.msrb.mxu2 %v387_v61 }
  0xe0   :  { %401 = vmatpush.msrb.mxu2 %v386_v62 }
  0xe2   :  { %402 = vmatpush.msrb.mxu2 %v385_v63 }
  0xe4   :  { %403 = vmatpush.msrb.mxu2 %v384_v0 }
  0xe6   :  { %404 = vmatpush.msrb.mxu2 %v383_v1 }
  0xe8   :  { %405 = vmatpush.msrb.mxu2 %v382_v2 }
  0xea   :  { %406 = vmatpush.msrb.mxu2 %v381_v3 }
  0xec   :  { %407 = vmatpush.msrb.mxu2 %v380_v4 }
  0xee   :  { %408 = vmatpush.msrb.mxu2 %v379_v9 }
  0xf0   :  { %409 = vmatpush.msrb.mxu2 %v378_v10 }
 0x15a   :  { %v208_v12 = vpop.f32.mrf.mxu1 }
 0x15b   :  { %v209_v13 = vadd.f32 %v462_v11, %v208_v12  ;;  %v377_v11 = vld [vmem:[#allocation13] sm:$0xff]  ;;  %v464_v12 = vld [vmem:[#allocation10 + $0x190] ss:$0 sm:$0xff] }
 0x15c   :  { %410 = vmatpush.msrb.mxu2 %v377_v11 }
 0x15d   :  { %v211_v14 = vmax.f32 %v209_v13, 0.0 }
 0x15f   :  { %267 = vmatmul.f32.vlgmr.msra.gmra.mxu2 %v211_v14  ;;  %287 = vmatmul.f32.vlgmr.msra.gmra.mxu3 %v211_v14 }
 0x1e2   :  { %v268_v35 = vpop.f32.mrf.mxu2  ;;  %v288_v36 = vpop.f32.mrf.mxu3 }
 0x1e3   :  { %v269_v38 = vadd.f32 %v268_v35, %v247_v32  ;;  %v289_v39 = vadd.f32 %v288_v36, %v248_v33 }
 0x1e5   :  { %v291_v41 = vmax.f32 %v269_v38, 0.0  ;;  %v292_v42 = vmax.f32 %v289_v39, 0.0 }
 0x1e7   :  { %418 = vst [vmem:[#allocation15 + $0x10] sm:$0xff] %v291_v41  ;;  %v294_v44 = vmul.f32 0.5, %v292_v42 }
 0x1e8   :  { %419 = vst [vmem:[#allocation15 + $0x18] sm:$0xff] %v292_v42 }
 0x1e9   :  { %v295_v46 = vmul.f32 1.442695, %v294_v44 }
 0x1eb   :  { %466 = vpow2.f32 %v295_v46 }
 0x1f1   :  { %v467_v50 = vpop.eup %466 }
 0x1f2   :  { %v297_v51 = vmul.f32 %v467_v50, %v293_v49 }
 0x1f4   :  { %v298_v52 = vadd.f32 %v297_v51, %v291_v41 }
 0x1f6   :  { %333 = vmatmul.f32.vlgmr.msrb.gmra.mxu0 %v298_v52  ;;  %417 = vst [vmem:[#allocation15 + $0x8] sm:$0xff] %v298_v52 }
 0x273   :  { %v334_v6 = vpop.f32.mrf.mxu0 }
 0x274   :  { %v335_v7 = vadd.f32 %v463_v5, %v334_v6 }
 0x276   :  { %v337_v8 = vmax.f32 %v335_v7, 0.0 }
 0x278   :  { %372 = vmatmul.f32.vlgmr.msrb.gmra.mxu1 %v337_v8 }
 0x2f5   :  { %v373_v13 = vpop.f32.mrf.mxu1 }
 0x2f6   :  { %v374_v14 = vadd.f32 %v464_v12, %v373_v13 }
 0x2f8   :  { %v376_v15 = vmax.f32 %v374_v14, 0.0 }
 0x2fa   :  { %411 = vmatmul.f32.vlgmr.msrb.gmra.mxu2 %v376_v15 }
 0x37d   :  { %v412_v17 = vpop.f32.mrf.mxu2 }
 0x37e   :  { %v413_v18 = vadd.f32 %v465_v16, %v412_v17 }
 0x380   :  { %v415_v19 = vmax.f32 %v413_v18, 0.0 }
 0x382   :  { %416 = vst [vmem:[#allocation15] sm:$0xff] %v415_v19 }
 0x383   :  { %430 = dma.vmem_to_hbm [thread:$0]  %s426_s2, 512, %s428_s29, [#allocation6]  }
 0x384   :  { %658 = dma.done.wait [#allocation6], 512  }
 0x385   :  { %659 = vsyncadd [#allocation6], 4294966784 }
 0x386   :  { %435 = vsyncpa [#allocation5], 1 }
 0x387   :  { %436 = vsyncpa [#allocation8], 1 }
 0x388   :  { %437 = vsyncpa [#allocation11], 1 }
 0x389   :  { %438 = vsyncpa [#allocation14], 1 }
 0x38a   :  { %439 = vsyncpa [#allocation6], 1 }

</bundles_post_ra>
